<compile_context>
chip_gen: v5e
topology: v5e:2x2
jax: 0.10.0
libtpu: 0.0.40
codegen_flags: <defaults>
</compile_context>

<pallas_src>
import functools

import jax
import jax.numpy as jnp
from jax.experimental import pallas as pl
from jax.experimental.pallas import tpu as pltpu


def _round_up(x: int, m: int) -> int:
    return ((x + m - 1) // m) * m


# ----------------------------------------------------------------------------
# Kernel bodies
# ----------------------------------------------------------------------------
def _head_kernel(pooled_ref, w1_ref, b1_ref, w2_ref, b2_ref, out_ref):
    """ValuePredictionHead on an already pooled [B_blk, E] bf16 tile.

    fc1 runs on the MXU (bf16 inputs, f32 accumulation); bias/ReLU and the
    N=1 fc2 (VPU multiply + lane reduce) stay in f32.
    Dropout(p=0.1) is identity in eval mode.
    """
    h = jnp.dot(pooled_ref[...], w1_ref[...],
                preferred_element_type=jnp.float32)            # [B_blk, H] f32
    h = jnp.maximum(h + b1_ref[...], 0.0)
    logits = jnp.sum(h * w2_ref[...], axis=-1, keepdims=True) + b2_ref[0, 0]
    out_ref[...] = logits


def _avg_head_kernel(reps_ref, w1_ref, b1_ref, w2_ref, b2_ref, out_ref,
                     acc_ref, *, inv_l):
    """Average pooling over an L grid + ValuePredictionHead.

    Grid = (batch blocks 'parallel', L blocks 'arbitrary').  Partial token
    sums accumulate in an f32 VMEM scratch; the head runs on the last L step
    of each batch block.
    """
    l = pl.program_id(1)

    @pl.when(l == 0)
    def _():
        acc_ref[...] = jnp.zeros_like(acc_ref)

    acc_ref[...] += jnp.sum(reps_ref[...].astype(jnp.float32), axis=1)

    @pl.when(l == pl.num_programs(1) - 1)
    def _():
        pooled = (acc_ref[...] * jnp.float32(inv_l)).astype(jnp.bfloat16)
        h = jnp.dot(pooled, w1_ref[...],
                    preferred_element_type=jnp.float32)
        h = jnp.maximum(h + b1_ref[...], 0.0)
        logits = jnp.sum(h * w2_ref[...], axis=-1, keepdims=True) + b2_ref[0, 0]
        out_ref[...] = logits


# ----------------------------------------------------------------------------
# Wrapper: pooling + head via pallas_call, MSE loss in the wrapper
# ----------------------------------------------------------------------------
def esm_value_head_forward(reps, w1, b1, w2, b2, labels, *, pooling="first_token"):
    """reps: [B, L, E]; labels: [B].  Returns (loss scalar f32, logits [B] f32)."""
    B, L, E = reps.shape
    H = w1.shape[1]

    # bf16 for the MXU-facing tensors (halves HBM/VMEM traffic), f32 for VPU math.
    w1_bf16 = w1.astype(jnp.bfloat16)
    b1_f32 = b1.reshape(1, H).astype(jnp.float32)
    w2_row = w2.reshape(1, H).astype(jnp.float32)      # fc2 as VPU mul + reduce
    b2_smem = b2.reshape(1, 1).astype(jnp.float32)     # scalar -> SMEM

    # Batch tiling: sublane-aligned small batches, 128-row blocks for large B.
    b_blk = 128 if B >= 128 else _round_up(B, 8)
    b_pad = _round_up(B, b_blk)
    n_b = b_pad // b_blk

    smem_spec = pl.BlockSpec(memory_space=pltpu.MemorySpace.SMEM)
    weight_bytes = E * H * 2 + 2 * H * 4                # w1 bf16 + (b1, w2) f32

    if pooling == "first_token":
        # Only the first-token slab ever leaves HBM (no [B, L, E] DMA).
        pooled = reps[:, 0, :].astype(jnp.bfloat16)
        pooled = jnp.pad(pooled, ((0, b_pad - B), (0, 0)))

        tile_bytes = b_blk * E * 2 + weight_bytes + b_blk * 4
        vmem_limit = int(min(max(2 * tile_bytes + (4 << 20), 16 << 20), 64 << 20))
        cost = pl.CostEstimate(
            flops=2 * b_pad * E * H + 2 * b_pad * H,
            transcendentals=0,
            bytes_accessed=b_pad * E * 2 + weight_bytes + 4 + b_pad * 4)

        logits_pad = pl.pallas_call(
            _head_kernel,
            out_shape=jax.ShapeDtypeStruct((b_pad, 1), jnp.float32),
            grid_spec=pltpu.PrefetchScalarGridSpec(
                num_scalar_prefetch=0,
                grid=(n_b,),
                in_specs=[
                    pl.BlockSpec((b_blk, E), lambda i: (i, 0)),
                    pl.BlockSpec((E, H), lambda i: (0, 0)),   # weights resident
                    pl.BlockSpec((1, H), lambda i: (0, 0)),
                    pl.BlockSpec((1, H), lambda i: (0, 0)),
                    smem_spec,
                ],
                out_specs=pl.BlockSpec((b_blk, 1), lambda i: (i, 0)),
            ),
            compiler_params=pltpu.CompilerParams(
                dimension_semantics=("parallel",),
                vmem_limit_bytes=vmem_limit),
            cost_estimate=cost,
        )(pooled, w1_bf16, b1_f32, w2_row, b2_smem)

    elif pooling == "average":
        reps_bf16 = reps.astype(jnp.bfloat16)
        # Cap the double-buffered reps tile (~8 MiB each) so it also fits v7x's
        # 64 MiB VMEM; keep L blocks multiples of 16 (bf16 sublane packing).
        max_l = max(16, ((8 << 20) // max(b_blk * E * 2, 1)) // 16 * 16)
        l_blk = min(_round_up(L, 16), 128, max_l)
        l_pad = _round_up(L, l_blk)
        n_l = l_pad // l_blk
        reps_p = jnp.pad(reps_bf16,
                         ((0, b_pad - B), (0, l_pad - L), (0, 0)))

        tile_bytes = b_blk * l_blk * E * 2 + weight_bytes + b_blk * 4
        vmem_limit = int(min(max(2 * tile_bytes + b_blk * E * 4 + (4 << 20),
                                 16 << 20), 64 << 20))
        cost = pl.CostEstimate(
            flops=b_pad * l_pad * E + 2 * b_pad * E * H + 2 * b_pad * H,
            transcendentals=0,
            bytes_accessed=b_pad * l_pad * E * 2 + weight_bytes + 4 + b_pad * 4)

        kernel = functools.partial(_avg_head_kernel, inv_l=1.0 / L)
        logits_pad = pl.pallas_call(
            kernel,
            out_shape=jax.ShapeDtypeStruct((b_pad, 1), jnp.float32),
            grid_spec=pltpu.PrefetchScalarGridSpec(
                num_scalar_prefetch=0,
                grid=(n_b, n_l),
                in_specs=[
                    pl.BlockSpec((b_blk, l_blk, E), lambda i, l: (i, l, 0)),
                    pl.BlockSpec((E, H), lambda i, l: (0, 0)),
                    pl.BlockSpec((1, H), lambda i, l: (0, 0)),
                    pl.BlockSpec((1, H), lambda i, l: (0, 0)),
                    smem_spec,
                ],
                out_specs=pl.BlockSpec((b_blk, 1), lambda i, l: (i, 0)),
                scratch_shapes=[pltpu.VMEM((b_blk, E), jnp.float32)],
            ),
            compiler_params=pltpu.CompilerParams(
                dimension_semantics=("parallel", "arbitrary"),
                vmem_limit_bytes=vmem_limit),
            cost_estimate=cost,
        )(reps_p, w1_bf16, b1_f32, w2_row, b2_smem)

    else:
        raise ValueError("pooling must be first_token/average")

    logits = logits_pad[:B, 0]                           # matches logits.view(-1)
    # MSE loss computed in the wrapper from the returned logits (cheap; avoids
    # a cross-block reduction/accumulator inside the kernel).
    loss = jnp.mean((logits - labels.astype(jnp.float32)) ** 2)
    return loss, logits


# ----------------------------------------------------------------------------
# Synthetic stand-in for the ESM backbone (plain JAX glue).
# TODO(synk): the pretrained ESM transformer itself has no in-script
# equivalent; its output representations are synthesized deterministically.
# ----------------------------------------------------------------------------
def synthetic_esm_representations(input_ids, emb_table):
    # input_ids: [B, L] int32 ; emb_table: [vocab, E]
    return jnp.take(emb_table, input_ids, axis=0)        # [B, L, E]


if __name__ == "__main__":
    # Small shapes consistent with the module (embedding_size -> E, hidden 512).
    B, L, E, H, VOCAB = 8, 8, 128, 512, 32

    key = jax.random.PRNGKey(0)
    k_ids, k_emb, k_w1, k_b1, k_w2, k_b2, k_lbl = jax.random.split(key, 7)

    input_ids = jax.random.randint(k_ids, (B, L), 0, VOCAB, dtype=jnp.int32)
    emb_table = jax.random.normal(k_emb, (VOCAB, E), dtype=jnp.float32) * 0.1

    # ValuePredictionHead parameters (deterministic init).
    w1 = jax.random.normal(k_w1, (E, H), dtype=jnp.float32) * (1.0 / E ** 0.5)
    b1 = jax.random.normal(k_b1, (H,), dtype=jnp.float32) * 0.01
    w2 = jax.random.normal(k_w2, (H, 1), dtype=jnp.float32) * (1.0 / H ** 0.5)
    b2 = jax.random.normal(k_b2, (1,), dtype=jnp.float32) * 0.01

    labels = jax.random.normal(k_lbl, (B,), dtype=jnp.float32)

    reps = synthetic_esm_representations(input_ids, emb_table)   # [B, L, E]

    ok = True
    for pooling in ("first_token", "average"):
        loss, logits = esm_value_head_forward(
            reps, w1, b1, w2, b2, labels, pooling=pooling)
        jax.block_until_ready((loss, logits))

        # Reference in plain JAX (same bf16 matmul inputs, f32 accumulation,
        # eval-mode dropout) mirroring the kernel math.
        reps_bf16 = reps.astype(jnp.bfloat16)
        if pooling == "first_token":
            pooled_bf16 = reps_bf16[:, 0, :]
        else:
            pooled_f32 = (jnp.sum(reps_bf16.astype(jnp.float32), axis=1)
                          * jnp.float32(1.0 / L))
            pooled_bf16 = pooled_f32.astype(jnp.bfloat16)
        h_ref = jnp.maximum(
            jnp.dot(pooled_bf16, w1.astype(jnp.bfloat16),
                    preferred_element_type=jnp.float32)
            + b1.astype(jnp.float32), 0.0)
        logits_ref = (jnp.sum(h_ref * w2.reshape(1, H).astype(jnp.float32),
                              axis=-1) + b2[0])
        loss_ref = jnp.mean((logits_ref - labels) ** 2)

        ok &= bool(jnp.allclose(logits, logits_ref, atol=1e-3, rtol=5e-3))
        ok &= bool(jnp.allclose(loss, loss_ref, atol=1e-3, rtol=5e-3))

    assert ok, "mismatch vs reference"
    print("KERNEL_OK")
</pallas_src>

<mosaic_0001>
module attributes {stable_mosaic.version = 11 : i64} {
  func.func @_head_kernel(%arg0: i32, %arg1: memref<8x128xbf16, #tpu.memory_space<vmem>>, %arg2: memref<128x512xbf16, #tpu.memory_space<vmem>>, %arg3: memref<1x512xf32, #tpu.memory_space<vmem>>, %arg4: memref<1x512xf32, #tpu.memory_space<vmem>>, %arg5: memref<1x1xf32, #tpu.memory_space<smem>>, %arg6: memref<8x1xf32, #tpu.memory_space<vmem>>) attributes {dimension_semantics = [#tpu.dimension_semantics<parallel>], iteration_bounds = array<i64: 1>, scalar_prefetch = 0 : i64, scratch_operands = 0 : i64, tpu.core_type = #tpu.core_type<tc>, window_params = [{transform_indices = @transform_0, window_bounds = array<i64: 8, 128>}, {pipeline_mode = #tpu.pipeline_mode<synchronous>, transform_indices = @transform_1, window_bounds = array<i64: 128, 512>}, {pipeline_mode = #tpu.pipeline_mode<synchronous>, transform_indices = @transform_2, window_bounds = array<i64: 1, 512>}, {pipeline_mode = #tpu.pipeline_mode<synchronous>, transform_indices = @transform_3, window_bounds = array<i64: 1, 512>}, {transform_indices = @transform_4, window_bounds = array<i64: 1, 1>}, {transform_indices = @transform_5, window_bounds = array<i64: 8, 1>}]} {
    %c0 = arith.constant 0 : index
    %c0_0 = arith.constant 0 : index
    %0 = vector.load %arg1[%c0, %c0_0] : memref<8x128xbf16, #tpu.memory_space<vmem>>, vector<8x128xbf16>
    %c0_1 = arith.constant 0 : index
    %c0_2 = arith.constant 0 : index
    %1 = vector.load %arg2[%c0_1, %c0_2] : memref<128x512xbf16, #tpu.memory_space<vmem>>, vector<128x512xbf16>
    %cst = arith.constant dense<0.000000e+00> : vector<8x512xf32>
    %2 = tpu.matmul %0, %1, %cst {dimension_numbers = #tpu.dot_dimension_numbers<[1], [0], [0], [1], [0, 0, 1, 1], [], []>} : vector<8x128xbf16>, vector<128x512xbf16>, vector<8x512xf32> -> vector<8x512xf32>
    %c0_3 = arith.constant 0 : index
    %c0_4 = arith.constant 0 : index
    %3 = vector.load %arg3[%c0_3, %c0_4] : memref<1x512xf32, #tpu.memory_space<vmem>>, vector<1x512xf32>
    %4 = vector.broadcast %3 : vector<1x512xf32> to vector<8x512xf32>
    %5 = arith.addf %2, %4 : vector<8x512xf32>
    %cst_5 = arith.constant 0.000000e+00 : f32
    %6 = vector.broadcast %cst_5 : f32 to vector<8x512xf32>
    %7 = arith.maximumf %5, %6 : vector<8x512xf32>
    %c0_6 = arith.constant 0 : index
    %c0_7 = arith.constant 0 : index
    %8 = vector.load %arg4[%c0_6, %c0_7] : memref<1x512xf32, #tpu.memory_space<vmem>>, vector<1x512xf32>
    %9 = vector.broadcast %8 : vector<1x512xf32> to vector<8x512xf32>
    %10 = arith.mulf %7, %9 : vector<8x512xf32>
    %cst_8 = arith.constant dense<0.000000e+00> : vector<8xf32>
    %11 = vector.multi_reduction <add>, %10, %cst_8 [1] : vector<8x512xf32> to vector<8xf32>
    %12 = vector.shape_cast %11 : vector<8xf32> to vector<8x1xf32>
    %c0_9 = arith.constant 0 : index
    %c0_10 = arith.constant 0 : index
    %13 = memref.load %arg5[%c0_9, %c0_10] : memref<1x1xf32, #tpu.memory_space<smem>>
    %14 = vector.broadcast %13 : f32 to vector<8x1xf32>
    %15 = arith.addf %12, %14 : vector<8x1xf32>
    %c0_11 = arith.constant 0 : index
    %c0_12 = arith.constant 0 : index
    %16 = vector.load %arg6[%c0_11, %c0_12] : memref<8x1xf32, #tpu.memory_space<vmem>>, vector<8x1xf32>
    tpu.vector_store %arg6[%c0_11, %c0_12], %15 {strides = array<i32>} : memref<8x1xf32, #tpu.memory_space<vmem>>, vector<8x1xf32>,
    return
  }
  func.func @transform_0(%arg0: i32) -> (i32, i32) {
    %c0_i32 = arith.constant 0 : i32
    %c0_i32_0 = arith.constant 0 : i32
    return %arg0, %c0_i32 : i32, i32
  }
  func.func @transform_1(%arg0: i32) -> (i32, i32) {
    %c0_i32 = arith.constant 0 : i32
    %c0_i32_0 = arith.constant 0 : i32
    %c0_i32_1 = arith.constant 0 : i32
    return %c0_i32, %c0_i32_0 : i32, i32
  }
  func.func @transform_2(%arg0: i32) -> (i32, i32) {
    %c0_i32 = arith.constant 0 : i32
    %c0_i32_0 = arith.constant 0 : i32
    %c0_i32_1 = arith.constant 0 : i32
    return %c0_i32, %c0_i32_0 : i32, i32
  }
  func.func @transform_3(%arg0: i32) -> (i32, i32) {
    %c0_i32 = arith.constant 0 : i32
    %c0_i32_0 = arith.constant 0 : i32
    %c0_i32_1 = arith.constant 0 : i32
    return %c0_i32, %c0_i32_0 : i32, i32
  }
  func.func @transform_4(%arg0: i32) -> (i32, i32) {
    %c0_i32 = arith.constant 0 : i32
    %c0_i32_0 = arith.constant 0 : i32
    %c0_i32_1 = arith.constant 0 : i32
    return %c0_i32, %c0_i32_0 : i32, i32
  }
  func.func @transform_5(%arg0: i32) -> (i32, i32) {
    %c0_i32 = arith.constant 0 : i32
    %c0_i32_0 = arith.constant 0 : i32
    return %arg0, %c0_i32 : i32, i32
  }
}

</mosaic_0001>

<bundles_post_ra>
// kernel: tpu_custom_call.1
= control target key start
LH: loop header
LB: loop body
LE: loop exit
PB: predicated region body
PF: predicated region fallthrough
CT: control target
= control target key end

     0   :  { %11 = vsyncpa [#allocation4], 0  ;;  %s647_s0 = inlined_call_operand.hbm [shape: bf16[8,128], index: 0, kind: input, shape index: {}]   ;;  %s648_s1 = inlined_call_operand.hbm [shape: bf16[128,512], index: 1, kind: input, shape index: {}]   ;;  %s649_s2 = inlined_call_operand.hbm [shape: f32[1,512], index: 2, kind: input, shape index: {}]   ;;  %s650_s3 = inlined_call_operand.vmem [shape: f32[1,512], index: 3, kind: input, shape index: {}]   ;;  %s651_s4 = inlined_call_operand.<no memory space> [shape: f32[1,1], index: 4, kind: input, shape index: {}]   ;;  %s652_s5 = inlined_call_operand.vmem [shape: f32[8,1], index: 5, kind: output, shape index: {}]  }
   0x1   :  { %12 = vsyncpa [#allocation6], 0  ;;  %s28_s20 = sshll.u32 %s648_s1, 4  ;;  %s594_s21 = smov [#allocation5]   ;;  %s29_s20 = int_to_ptr.hbm [resolvable:$true] %s28_s20 }
   0x2   :  { %s30_s22 = sshll.u32 %s594_s21, 4  ;;  %s18_s25 = sshll.u32 %s647_s0, 4  ;;  %s31_s22 = int_to_ptr.vmem [resolvable:$true] %s30_s22  ;;  %s19_s25 = int_to_ptr.hbm [resolvable:$true] %s18_s25 }
   0x3   :  { %s595_s26 = smov 256   ;;  %s596_s27 = smov 16  }
   0x4   :  { %36 = dma.hbm_to_vmem [thread:$0]  %s29_s20, 4096, %s31_s22, [#allocation6], %s595_s26, %s595_s26, %s596_s27  }
   0x5   :  { %s597_s28 = smov [#allocation3]   ;;  %s42_s7 = sshll.u32 %s649_s2, 4  ;;  %s43_s7 = int_to_ptr.hbm [resolvable:$true] %s42_s7 }
   0x6   :  { %s20_s29 = sshll.u32 %s597_s28, 4  ;;  %s598_s1 = smov [#allocation7]   ;;  %s21_s29 = int_to_ptr.vmem [resolvable:$true] %s20_s29 }
   0x7   :  { %23 = dma.hbm_to_vmem [thread:$0]  %s19_s25, 64, %s21_s29, [#allocation4]  }
   0x8   :  { %s44_s8 = sshll.u32 %s598_s1, 4  ;;  %s45_s8 = int_to_ptr.vmem [resolvable:$true] %s44_s8 }
   0x9   :  { %47 = dma.hbm_to_vmem [thread:$0]  %s43_s7, 64, %s45_s8, [#allocation6]  }
   0xa   :  { %590 = dma.done.wait [#allocation4], 64  }
   0xb   :  { %591 = vsyncadd [#allocation4], 4294967232 }
   0xc   :  { %592 = dma.done.wait [#allocation6], 4160  }
   0xd   :  { %593 = vsyncadd [#allocation6], 4294963136  ;;  %v467_v0 = vld [vmem:[#allocation5 + $0xe0] sm:$0xf]  ;;  %v511_v1 = vld [vmem:[#allocation5 + $0xec] sm:$0xf0] }
   0xe   :  { %v509_v2 = vld [vmem:[#allocation5 + $0xe4] sm:$0xf]  ;;  %v468_v3 = vor.u32 %v511_v1, %v467_v0  ;;  %v469_v4 = vld [vmem:[#allocation5 + $0xf0] sm:$0xf0]  ;;  %v475_v5 = vld [vmem:[#allocation5 + $0xe8] sm:$0xf] }
   0xf   :  { %v512_v6 = vld [vmem:[#allocation5 + $0xf4] sm:$0xf0]  ;;  %v472_v7 = vor.u32 %v509_v2, %v469_v4  ;;  %v510_v9 = vld [vmem:[#allocation5 + $0xec] sm:$0xf]  ;;  %v477_v10 = vld [vmem:[#allocation5 + $0xf8] sm:$0xf0] }
  0x10   :  { %v476_v8 = vor.u32 %v512_v6, %v475_v5  ;;  %v451_v11 = vld [vmem:[#allocation5 + $0xc0] sm:$0xf]  ;;  %267 = vmatpush.bf16.msra.mxu0 %v468_v3  ;;  %v480_v12 = vor.u32 %v510_v9, %v477_v10  ;;  %v507_v13 = vld [vmem:[#allocation5 + $0xcc] sm:$0xf0]  ;;  %v505_v14 = vld [vmem:[#allocation5 + $0xc4] sm:$0xf] }
  0x11   :  { %v453_v15 = vld [vmem:[#allocation5 + $0xd0] sm:$0xf0]  ;;  %280 = vmatpush.bf16.msra.mxu1 %v472_v7  ;;  %v452_v16 = vor.u32 %v507_v13, %v451_v11  ;;  %v459_v18 = vld [vmem:[#allocation5 + $0xc8] sm:$0xf]  ;;  %v508_v19 = vld [vmem:[#allocation5 + $0xd4] sm:$0xf0] }
  0x12   :  { %293 = vmatpush.bf16.msra.mxu2 %v476_v8  ;;  %v456_v17 = vor.u32 %v505_v14, %v453_v15  ;;  %v506_v20 = vld [vmem:[#allocation5 + $0xcc] sm:$0xf]  ;;  %306 = vmatpush.bf16.msra.mxu3 %v480_v12  ;;  %v460_v21 = vor.u32 %v508_v19, %v459_v18  ;;  %v461_v22 = vld [vmem:[#allocation5 + $0xd8] sm:$0xf0]  ;;  %v435_v23 = vld [vmem:[#allocation5 + $0xa0] sm:$0xf] }
  0x13   :  { %v503_v24 = vld [vmem:[#allocation5 + $0xac] sm:$0xf0]  ;;  %v464_v25 = vor.u32 %v506_v20, %v461_v22  ;;  %v501_v26 = vld [vmem:[#allocation5 + $0xa4] sm:$0xf]  ;;  %v437_v27 = vld [vmem:[#allocation5 + $0xb0] sm:$0xf0] }
  0x14   :  { %v443_v28 = vld [vmem:[#allocation5 + $0xa8] sm:$0xf]  ;;  %268 = vmatpush.bf16.msra.mxu0 %v452_v16  ;;  %v436_v29 = vor.u32 %v503_v24, %v435_v23  ;;  %v504_v30 = vld [vmem:[#allocation5 + $0xb4] sm:$0xf0]  ;;  %v502_v31 = vld [vmem:[#allocation5 + $0xac] sm:$0xf]  ;;  %v440_v33 = vor.u32 %v501_v26, %v437_v27 }
  0x15   :  { %v445_v32 = vld [vmem:[#allocation5 + $0xb8] sm:$0xf0]  ;;  %281 = vmatpush.bf16.msra.mxu1 %v456_v17  ;;  %v444_v34 = vor.u32 %v504_v30, %v443_v28  ;;  %v419_v35 = vld [vmem:[#allocation5 + $0x80] sm:$0xf]  ;;  %v499_v36 = vld [vmem:[#allocation5 + $0x8c] sm:$0xf0] }
  0x16   :  { %294 = vmatpush.bf16.msra.mxu2 %v460_v21  ;;  %v497_v37 = vld [vmem:[#allocation5 + $0x84] sm:$0xf]  ;;  %307 = vmatpush.bf16.msra.mxu3 %v464_v25  ;;  %v448_v38 = vor.u32 %v502_v31, %v445_v32  ;;  %v421_v39 = vld [vmem:[#allocation5 + $0x90] sm:$0xf0]  ;;  %v427_v40 = vld [vmem:[#allocation5 + $0x88] sm:$0xf]  ;;  %v420_v44 = vor.u32 %v499_v36, %v419_v35 }
  0x17   :  { %v500_v41 = vld [vmem:[#allocation5 + $0x94] sm:$0xf0]  ;;  %v498_v42 = vld [vmem:[#allocation5 + $0x8c] sm:$0xf]  ;;  %v429_v43 = vld [vmem:[#allocation5 + $0x98] sm:$0xf0]  ;;  %v424_v45 = vor.u32 %v497_v37, %v421_v39 }
  0x18   :  { %269 = vmatpush.bf16.msra.mxu0 %v436_v29  ;;  %v428_v46 = vor.u32 %v500_v41, %v427_v40  ;;  %v403_v47 = vld [vmem:[#allocation5 + $0x60] sm:$0xf]  ;;  %v495_v48 = vld [vmem:[#allocation5 + $0x6c] sm:$0xf0]  ;;  %v493_v49 = vld [vmem:[#allocation5 + $0x64] sm:$0xf]  ;;  %v432_v50 = vor.u32 %v498_v42, %v429_v43 }
  0x19   :  { %282 = vmatpush.bf16.msra.mxu1 %v440_v33  ;;  %v405_v51 = vld [vmem:[#allocation5 + $0x70] sm:$0xf0]  ;;  %v411_v52 = vld [vmem:[#allocation5 + $0x68] sm:$0xf]  ;;  %v496_v53 = vld [vmem:[#allocation5 + $0x74] sm:$0xf0]  ;;  %v404_v56 = vor.u32 %v495_v48, %v403_v47 }
  0x1a   :  { %295 = vmatpush.bf16.msra.mxu2 %v444_v34  ;;  %308 = vmatpush.bf16.msra.mxu3 %v448_v38  ;;  %v494_v54 = vld [vmem:[#allocation5 + $0x6c] sm:$0xf]  ;;  %v413_v55 = vld [vmem:[#allocation5 + $0x78] sm:$0xf0]  ;;  %v408_v57 = vor.u32 %v493_v49, %v405_v51  ;;  %v412_v58 = vor.u32 %v496_v53, %v411_v52  ;;  %v387_v59 = vld [vmem:[#allocation5 + $0x40] sm:$0xf] }
  0x1b   :  { %v491_v60 = vld [vmem:[#allocation5 + $0x4c] sm:$0xf0]  ;;  %v489_v61 = vld [vmem:[#allocation5 + $0x44] sm:$0xf]  ;;  %v416_v62 = vor.u32 %v494_v54, %v413_v55  ;;  %v389_v63 = vld [vmem:[#allocation5 + $0x50] sm:$0xf0] }
  0x1c   :  { %270 = vmatpush.bf16.msra.mxu0 %v420_v44  ;;  %v395_v0 = vld [vmem:[#allocation5 + $0x48] sm:$0xf]  ;;  %v492_v1 = vld [vmem:[#allocation5 + $0x54] sm:$0xf0]  ;;  %v490_v2 = vld [vmem:[#allocation5 + $0x4c] sm:$0xf]  ;;  %v388_v4 = vor.u32 %v491_v60, %v387_v59  ;;  %v392_v5 = vor.u32 %v489_v61, %v389_v63 }
  0x1d   :  { %283 = vmatpush.bf16.msra.mxu1 %v424_v45  ;;  %v397_v3 = vld [vmem:[#allocation5 + $0x58] sm:$0xf0]  ;;  %v396_v6 = vor.u32 %v492_v1, %v395_v0  ;;  %v371_v7 = vld [vmem:[#allocation5 + $0x20] sm:$0xf]  ;;  %v487_v8 = vld [vmem:[#allocation5 + $0x2c] sm:$0xf0] }
  0x1e   :  { %296 = vmatpush.bf16.msra.mxu2 %v428_v46  ;;  %309 = vmatpush.bf16.msra.mxu3 %v432_v50  ;;  %v485_v9 = vld [vmem:[#allocation5 + $0x24] sm:$0xf]  ;;  %v400_v10 = vor.u32 %v490_v2, %v397_v3  ;;  %v373_v11 = vld [vmem:[#allocation5 + $0x30] sm:$0xf0]  ;;  %v379_v12 = vld [vmem:[#allocation5 + $0x28] sm:$0xf]  ;;  %v372_v16 = vor.u32 %v487_v8, %v371_v7  ;;  %v343_v2 = vstv %s651_s4 }
  0x1f   :  { %v488_v13 = vld [vmem:[#allocation5 + $0x34] sm:$0xf0]  ;;  %v486_v14 = vld [vmem:[#allocation5 + $0x2c] sm:$0xf]  ;;  %v381_v15 = vld [vmem:[#allocation5 + $0x38] sm:$0xf0]  ;;  %v376_v17 = vor.u32 %v485_v9, %v373_v11 }
  0x20   :  { %271 = vmatpush.bf16.msra.mxu0 %v404_v56  ;;  %v380_v18 = vor.u32 %v488_v13, %v379_v12  ;;  %v355_v19 = vld [vmem:[#allocation5] sm:$0xf]  ;;  %v483_v20 = vld [vmem:[#allocation5 + $0xc] sm:$0xf0]  ;;  %v481_v21 = vld [vmem:[#allocation5 + $0x4] sm:$0xf]  ;;  %v384_v22 = vor.u32 %v486_v14, %v381_v15 }
  0x21   :  { %284 = vmatpush.bf16.msra.mxu1 %v408_v57  ;;  %v357_v23 = vld [vmem:[#allocation5 + $0x10] sm:$0xf0]  ;;  %v363_v24 = vld [vmem:[#allocation5 + $0x8] sm:$0xf]  ;;  %v484_v25 = vld [vmem:[#allocation5 + $0x14] sm:$0xf0]  ;;  %v356_v28 = vor.u32 %v483_v20, %v355_v19 }
  0x22   :  { %297 = vmatpush.bf16.msra.mxu2 %v412_v58  ;;  %310 = vmatpush.bf16.msra.mxu3 %v416_v62  ;;  %v482_v26 = vld [vmem:[#allocation5 + $0xc] sm:$0xf]  ;;  %v365_v27 = vld [vmem:[#allocation5 + $0x18] sm:$0xf0]  ;;  %v360_v29 = vor.u32 %v481_v21, %v357_v23  ;;  %v364_v30 = vor.u32 %v484_v25, %v363_v24  ;;  %v97_v33 = vld [vmem:[#allocation7] sm:$0xf] }
  0x23   :  { %v368_v31 = vor.u32 %v482_v26, %v365_v27  ;;  %v64_v32 = vld [vmem:[#allocation3] sm:$0xf]  ;;  %v99_v34 = vperm.slane %v97_v33, 0  ;;  %v100_v35 = vperm.slane %v97_v33, 1  ;;  %v101_v45 = vperm.slane %v97_v33, 2 }
  0x24   :  { %272 = vmatpush.bf16.msra.mxu0 %v388_v4  ;;  %v323_v36 = vld [vmem:[%s650_s3] sm:$0xf]  ;;  %v102_v46 = vperm.slane %v97_v33, 3  ;;  %vm345_vm0 = vcmask 7168  }
  0x25   :  { %285 = vmatpush.bf16.msra.mxu1 %v392_v5  ;;  %v325_v40 = vperm.slane %v323_v36, 0  ;;  %v326_v42 = vperm.slane %v323_v36, 1  ;;  %v327_v51 = vperm.slane %v323_v36, 2  ;;  %v328_v56 = vperm.slane %v323_v36, 3 }
  0x26   :  { %298 = vmatpush.bf16.msra.mxu2 %v396_v6  ;;  %311 = vmatpush.bf16.msra.mxu3 %v400_v10 }
  0x28   :  { %273 = vmatpush.bf16.msra.mxu0 %v372_v16 }
  0x29   :  { %286 = vmatpush.bf16.msra.mxu1 %v376_v17 }
  0x2a   :  { %299 = vmatpush.bf16.msra.mxu2 %v380_v18  ;;  %312 = vmatpush.bf16.msra.mxu3 %v384_v22 }
  0x2c   :  { %274 = vmatpush.bf16.msra.mxu0 %v356_v28 }
  0x2d   :  { %287 = vmatpush.bf16.msra.mxu1 %v360_v29 }
  0x2e   :  { %300 = vmatpush.bf16.msra.mxu2 %v364_v30  ;;  %313 = vmatpush.bf16.msra.mxu3 %v368_v31 }
  0x2f   :  { %275 = vmatmul.bf16.vlgmr.msra.gmra.mxu0 %v64_v32 }
  0x30   :  { %288 = vmatmul.bf16.vlgmr.msra.gmra.mxu1 %v64_v32 }
  0x31   :  { %301 = vmatmul.bf16.vlgmr.msra.gmra.mxu2 %v64_v32  ;;  %314 = vmatmul.bf16.vlgmr.msra.gmra.mxu3 %v64_v32 }
  0xac   :  { %v276_v37 = vpop.f32.mrf.mxu0 }
  0xad   :  { %v277_v38 = vadd.f32 %v276_v37, %v99_v34  ;;  %v289_v39 = vpop.f32.mrf.mxu1 }
  0xae   :  { %v290_v41 = vadd.f32 %v289_v39, %v100_v35 }
  0xaf   :  { %v319_v43 = vmax.f32 %v277_v38, 0.0 }
  0xb0   :  { %v320_v44 = vmax.f32 %v290_v41, 0.0 }
  0xb1   :  { %v333_v47 = vmul.f32 %v325_v40, %v319_v43 }
  0xb2   :  { %v334_v48 = vmul.f32 %v326_v42, %v320_v44 }
  0xb4   :  { %v302_v49 = vpop.f32.mrf.mxu2  ;;  %v315_v52 = vpop.f32.mrf.mxu3  ;;  %v337_v58 = vadd.f32 %v334_v48, %v333_v47 }
  0xb5   :  { %v303_v50 = vadd.f32 %v302_v49, %v101_v45  ;;  %v278_v53 = vpop.f32.mrf.mxu0  ;;  %v316_v54 = vadd.f32 %v315_v52, %v102_v46  ;;  %v291_v55 = vpop.f32.mrf.mxu1 }
  0xb7   :  { %v321_v57 = vmax.f32 %v303_v50, 0.0  ;;  %v322_v59 = vmax.f32 %v316_v54, 0.0 }
  0xb9   :  { %v335_v60 = vmul.f32 %v327_v51, %v321_v57  ;;  %v336_v61 = vmul.f32 %v328_v56, %v322_v59 }
  0xbb   :  { %v338_v62 = vadd.f32 %v337_v58, %v335_v60 }
  0xbc   :  { %v304_v63 = vpop.f32.mrf.mxu2  ;;  %v317_v0 = vpop.f32.mrf.mxu3 }
  0xbd   :  { %v339_v1 = vadd.f32 %v338_v62, %v336_v61 }
  0xbf   :  { %340 = vadd.xlane.f32.xlu0 %v339_v1 }
 0x132   :  { %v341_v3 = vpop.xlane.xlu0 %340 }
 0x133   :  { %v344_v4 = vadd.f32 %v343_v2, %v341_v3 }
 0x135   :  { %346 = vst.msk [vmem:[%s652_s5] sm:$0xff] %vm345_vm0, %v344_v4 }
 0x136   :  { %351 = vsyncpa [#allocation4], 1 }
 0x137   :  { %352 = vsyncpa [#allocation6], 1 }

</bundles_post_ra>
